<compile_context>
chip_gen: v5e
topology: v5e:2x2
jax: 0.10.0
libtpu: 0.0.40
codegen_flags: <defaults>
</compile_context>

<pallas_src>
import functools
import math

import jax
import jax.numpy as jnp
from jax.experimental import pallas as pl
from jax.experimental.pallas import tpu as pltpu

LN_EPS = 1e-5  # matches torch.nn.LayerNorm default


def _round_up(x, m):
    return ((x + m - 1) // m) * m


def _norm_kernel(x_ref, w_ref, b_ref, g_ref, bt_ref, o_ref, acc_ref, *,
                 d_real, d_pad):
    k = pl.program_id(1)

    @pl.when(k == 0)
    def _init():
        acc_ref[...] = jnp.zeros_like(acc_ref)

    # Linear partial product: (tile, tk)bf16 @ (tk, Dp)bf16 -> f32 on the MXU.
    acc_ref[...] += jnp.dot(x_ref[...].astype(jnp.bfloat16), w_ref[...],
                            preferred_element_type=jnp.float32)

    @pl.when(k == pl.num_programs(1) - 1)
    def _finalize():
        # Padded columns of acc are exactly 0 (zero-padded W columns) and the
        # padded bias is 0, so padded columns of y are exactly 0.
        y = acc_ref[...] + b_ref[...]
        inv_d = 1.0 / d_real
        mean = jnp.sum(y, axis=-1, keepdims=True) * inv_d
        centered = y - mean
        sq = jnp.sum(centered * centered, axis=-1, keepdims=True)
        if d_pad != d_real:
            # Each padded column of `centered` is exactly (-mean); subtract
            # their contribution instead of a full (tile, Dp) mask multiply.
            sq = jnp.maximum(sq - (d_pad - d_real) * (mean * mean), 0.0)
        inv_std = jax.lax.rsqrt(sq * inv_d + LN_EPS)
        scale = g_ref[...] * inv_std            # fold gamma into the scale
        out = centered * scale + bt_ref[...]
        # Store only the real D columns; the output array is un-padded (M, D).
        o_ref[...] = out[:, :d_real].astype(o_ref.dtype)


def _plan(M, D, Dp, vmem_cap):
    """Pick (tile_rows, tk, num_k, vmem_limit) for this chip's VMEM."""
    budget = int(0.80 * vmem_cap)

    # K-split only when the resident bf16 weight gets large AND D is
    # 128-aligned so the K tiles of x never read out of bounds.
    w_resident = D * Dp * 2
    if D % 128 == 0 and w_resident > budget // 3:
        tk = next(t for t in (1024, 512, 256, 128) if D % t == 0)
        w_bytes = 2 * tk * Dp * 2               # streamed, double-buffered
    else:
        tk = D
        w_bytes = w_resident                    # resident, single-buffered
    num_k = D // tk
    param_bytes = 3 * Dp * 4

    def need(tile):
        return (2 * tile * tk * 4               # x tiles (f32, double-buffered)
                + 2 * tile * D * 4              # out tiles (f32, double-buffered)
                + tile * Dp * 4                 # f32 accumulator scratch
                + 2 * tile * Dp * 4             # live f32 temporaries (y/centered)
                + w_bytes + param_bytes)

    tile = 8
    for t in (1024, 512, 256, 128, 64, 32, 16, 8):
        if need(t) <= budget:
            tile = t
            break
    # Keep >= 2 row-grid steps so both v7x TensorCores get work on short M.
    tile = max(8, min(tile, _round_up(pl.cdiv(M, 2), 8)))

    vmem_limit = max(need(tile) + (4 << 20), 16 << 20)
    vmem_limit = min(vmem_limit, int(0.9 * vmem_cap))
    return tile, tk, num_k, int(vmem_limit)


def norm_forward(x, w, b, gamma, beta):
    """x: (batch, seq, D); w: (D, D) already transposed to (in_dim, out_dim)."""
    B, S, D = x.shape
    M = B * S
    Dp = _round_up(D, 128)      # lane-dense width used for W / in-kernel LN math

    try:
        vmem_cap = int(pltpu.get_tpu_info().vmem_capacity_bytes)
    except Exception:
        vmem_cap = 64 << 20     # conservative (v7x-sized) fallback

    tile, tk, num_k, vmem_limit = _plan(M, D, Dp, vmem_cap)
    grid = (pl.cdiv(M, tile), num_k)

    # Only the small parameters are padded/cast on the host; x goes in as-is
    # (bf16 cast happens inside the kernel, avoiding an extra HBM pass over x).
    f32 = jnp.float32
    x2d = x.reshape(M, D)
    wb = jnp.pad(w.astype(f32), ((0, 0), (0, Dp - D))).astype(jnp.bfloat16)
    b2d = jnp.pad(b.reshape(1, D).astype(f32), ((0, 0), (0, Dp - D)))
    g2d = jnp.pad(gamma.reshape(1, D).astype(f32), ((0, 0), (0, Dp - D)))
    bt2d = jnp.pad(beta.reshape(1, D).astype(f32), ((0, 0), (0, Dp - D)))

    resident = dict(pipeline_mode=pl.Buffered(1))   # grid-invariant operands
    w_kwargs = resident if num_k == 1 else {}       # weight streams if K-split

    kernel = functools.partial(_norm_kernel, d_real=D, d_pad=Dp)

    cost = pl.CostEstimate(
        flops=2 * M * D * Dp,
        transcendentals=M,                           # one rsqrt per row
        bytes_accessed=M * D * 4 * 2 + D * Dp * 2 + 3 * Dp * 4,
    )

    out2d = pl.pallas_call(
        kernel,
        out_shape=jax.ShapeDtypeStruct((M, D), x.dtype),
        grid_spec=pltpu.PrefetchScalarGridSpec(
            num_scalar_prefetch=0,
            grid=grid,
            in_specs=[
                pl.BlockSpec((tile, tk), lambda i, k: (i, k)),            # x
                pl.BlockSpec((tk, Dp), lambda i, k: (k, 0), **w_kwargs),  # W
                pl.BlockSpec((1, Dp), lambda i, k: (0, 0), **resident),   # bias
                pl.BlockSpec((1, Dp), lambda i, k: (0, 0), **resident),   # gamma
                pl.BlockSpec((1, Dp), lambda i, k: (0, 0), **resident),   # beta
            ],
            out_specs=pl.BlockSpec((tile, D), lambda i, k: (i, 0)),
            scratch_shapes=[pltpu.VMEM((tile, Dp), jnp.float32)],
        ),
        compiler_params=pltpu.CompilerParams(
            dimension_semantics=("parallel", "arbitrary"),
            vmem_limit_bytes=vmem_limit,
        ),
        cost_estimate=cost,
    )(x2d, wb, b2d, g2d, bt2d)

    return out2d.reshape(B, S, D)


if __name__ == "__main__":
    # Small shapes consistent with the module: (batch=2, seq=8, embed=32)
    B, S, D = 2, 8, 32

    key = jax.random.PRNGKey(0)
    kx, kw, kb = jax.random.split(key, 3)

    x = jax.random.normal(kx, (B, S, D), dtype=jnp.float32)

    # Deterministic Linear init (matches nn.Linear's uniform(-1/sqrt(D), 1/sqrt(D)))
    bound = 1.0 / math.sqrt(D)
    w_pt = jax.random.uniform(kw, (D, D), minval=-bound, maxval=bound,
                              dtype=jnp.float32)    # PyTorch layout (out, in)
    b_lin = jax.random.uniform(kb, (D,), minval=-bound, maxval=bound,
                               dtype=jnp.float32)
    w = w_pt.T  # kernel expects (in, out)

    # LayerNorm affine params (PyTorch defaults: ones / zeros)
    gamma = jnp.ones((D,), dtype=jnp.float32)
    beta = jnp.zeros((D,), dtype=jnp.float32)

    out = norm_forward(x, w, b_lin, gamma, beta)
    jax.block_until_ready(out)

    # Reference in plain JAX, mirroring the kernel's bf16 matmul / f32 LN math.
    xr = x.astype(jnp.bfloat16).astype(jnp.float32).reshape(B * S, D)
    wr = w.astype(jnp.bfloat16).astype(jnp.float32)
    y_ref = xr @ wr + b_lin
    mean = jnp.mean(y_ref, axis=-1, keepdims=True)
    var = jnp.mean((y_ref - mean) ** 2, axis=-1, keepdims=True)
    ref = ((y_ref - mean) / jnp.sqrt(var + LN_EPS) * gamma + beta).reshape(B, S, D)

    assert out.shape == (B, S, D)
    assert jnp.allclose(out, ref, atol=2e-3, rtol=2e-3), (
        float(jnp.max(jnp.abs(out - ref))))
    print("KERNEL_OK")
</pallas_src>

<mosaic_0001>
module attributes {stable_mosaic.version = 11 : i64} {
  func.func @_norm_kernel(%arg0: i32, %arg1: i32, %arg2: memref<8x32xf32, #tpu.memory_space<vmem>>, %arg3: memref<32x128xbf16, #tpu.memory_space<vmem>>, %arg4: memref<1x128xf32, #tpu.memory_space<vmem>>, %arg5: memref<1x128xf32, #tpu.memory_space<vmem>>, %arg6: memref<1x128xf32, #tpu.memory_space<vmem>>, %arg7: memref<8x32xf32, #tpu.memory_space<vmem>>, %arg8: memref<8x128xf32, #tpu.memory_space<vmem>>) attributes {dimension_semantics = [#tpu.dimension_semantics<parallel>, #tpu.dimension_semantics<arbitrary>], iteration_bounds = array<i64: 2, 1>, scalar_prefetch = 0 : i64, scratch_operands = 1 : i64, tpu.core_type = #tpu.core_type<tc>, window_params = [{transform_indices = @transform_0, window_bounds = array<i64: 8, 32>}, {pipeline_mode = #tpu.pipeline_mode<synchronous>, transform_indices = @transform_1, window_bounds = array<i64: 32, 128>}, {pipeline_mode = #tpu.pipeline_mode<synchronous>, transform_indices = @transform_2, window_bounds = array<i64: 1, 128>}, {pipeline_mode = #tpu.pipeline_mode<synchronous>, transform_indices = @transform_3, window_bounds = array<i64: 1, 128>}, {pipeline_mode = #tpu.pipeline_mode<synchronous>, transform_indices = @transform_4, window_bounds = array<i64: 1, 128>}, {transform_indices = @transform_5, window_bounds = array<i64: 8, 32>}]} {
    %c0_i32 = arith.constant 0 : i32
    %0 = arith.cmpi eq, %arg1, %c0_i32 : i32
    %1 = arith.extui %0 : i1 to i32
    %c0_i32_0 = arith.constant 0 : i32
    %2 = arith.cmpi ne, %1, %c0_i32_0 : i32
    scf.if %2 {
      %cst_10 = arith.constant 0.000000e+00 : f32
      %13 = vector.broadcast %cst_10 : f32 to vector<8x128xf32>
      %c0_11 = arith.constant 0 : index
      %c0_12 = arith.constant 0 : index
      %14 = vector.load %arg8[%c0_11, %c0_12] : memref<8x128xf32, #tpu.memory_space<vmem>>, vector<8x128xf32>
      tpu.vector_store %arg8[%c0_11, %c0_12], %13 {strides = array<i32>} : memref<8x128xf32, #tpu.memory_space<vmem>>, vector<8x128xf32>,
    } else {
    }
    %c0 = arith.constant 0 : index
    %c0_1 = arith.constant 0 : index
    %3 = vector.load %arg8[%c0, %c0_1] : memref<8x128xf32, #tpu.memory_space<vmem>>, vector<8x128xf32>
    %c0_2 = arith.constant 0 : index
    %c0_3 = arith.constant 0 : index
    %4 = vector.load %arg2[%c0_2, %c0_3] : memref<8x32xf32, #tpu.memory_space<vmem>>, vector<8x32xf32>
    %5 = arith.truncf %4 : vector<8x32xf32> to vector<8x32xbf16>
    %c0_4 = arith.constant 0 : index
    %c0_5 = arith.constant 0 : index
    %6 = vector.load %arg3[%c0_4, %c0_5] : memref<32x128xbf16, #tpu.memory_space<vmem>>, vector<32x128xbf16>
    %cst = arith.constant dense<0.000000e+00> : vector<8x128xf32>
    %7 = tpu.matmul %5, %6, %cst {dimension_numbers = #tpu.dot_dimension_numbers<[1], [0], [0], [1], [0, 0, 1, 1], [], []>} : vector<8x32xbf16>, vector<32x128xbf16>, vector<8x128xf32> -> vector<8x128xf32>
    %8 = arith.addf %3, %7 : vector<8x128xf32>
    %c0_6 = arith.constant 0 : index
    %c0_7 = arith.constant 0 : index
    %9 = vector.load %arg8[%c0_6, %c0_7] : memref<8x128xf32, #tpu.memory_space<vmem>>, vector<8x128xf32>
    tpu.vector_store %arg8[%c0_6, %c0_7], %8 {strides = array<i32>} : memref<8x128xf32, #tpu.memory_space<vmem>>, vector<8x128xf32>,
    %c0_i32_8 = arith.constant 0 : i32
    %10 = arith.cmpi eq, %arg1, %c0_i32_8 : i32
    %11 = arith.extui %10 : i1 to i32
    %c0_i32_9 = arith.constant 0 : i32
    %12 = arith.cmpi ne, %11, %c0_i32_9 : i32
    scf.if %12 {
      %c0_10 = arith.constant 0 : index
      %c0_11 = arith.constant 0 : index
      %13 = vector.load %arg8[%c0_10, %c0_11] : memref<8x128xf32, #tpu.memory_space<vmem>>, vector<8x128xf32>
      %c0_12 = arith.constant 0 : index
      %c0_13 = arith.constant 0 : index
      %14 = vector.load %arg4[%c0_12, %c0_13] : memref<1x128xf32, #tpu.memory_space<vmem>>, vector<1x128xf32>
      %15 = vector.broadcast %14 : vector<1x128xf32> to vector<8x128xf32>
      %16 = arith.addf %13, %15 : vector<8x128xf32>
      %cst_14 = arith.constant dense<0.000000e+00> : vector<8xf32>
      %17 = vector.multi_reduction <add>, %16, %cst_14 [1] : vector<8x128xf32> to vector<8xf32>
      %18 = vector.shape_cast %17 : vector<8xf32> to vector<8x1xf32>
      %cst_15 = arith.constant 3.125000e-02 : f32
      %19 = vector.broadcast %cst_15 : f32 to vector<8x1xf32>
      %20 = arith.mulf %18, %19 : vector<8x1xf32>
      %21 = vector.broadcast %20 : vector<8x1xf32> to vector<8x128xf32>
      %22 = arith.subf %16, %21 : vector<8x128xf32>
      %23 = arith.mulf %22, %22 : vector<8x128xf32>
      %cst_16 = arith.constant dense<0.000000e+00> : vector<8xf32>
      %24 = vector.multi_reduction <add>, %23, %cst_16 [1] : vector<8x128xf32> to vector<8xf32>
      %25 = vector.shape_cast %24 : vector<8xf32> to vector<8x1xf32>
      %26 = arith.mulf %20, %20 : vector<8x1xf32>
      %cst_17 = arith.constant 9.600000e+01 : f32
      %27 = vector.broadcast %cst_17 : f32 to vector<8x1xf32>
      %28 = arith.mulf %27, %26 : vector<8x1xf32>
      %29 = arith.subf %25, %28 : vector<8x1xf32>
      %cst_18 = arith.constant 0.000000e+00 : f32
      %30 = vector.broadcast %cst_18 : f32 to vector<8x1xf32>
      %31 = arith.maximumf %29, %30 : vector<8x1xf32>
      %cst_19 = arith.constant 3.125000e-02 : f32
      %32 = vector.broadcast %cst_19 : f32 to vector<8x1xf32>
      %33 = arith.mulf %31, %32 : vector<8x1xf32>
      %cst_20 = arith.constant 9.99999974E-6 : f32
      %34 = vector.broadcast %cst_20 : f32 to vector<8x1xf32>
      %35 = arith.addf %33, %34 : vector<8x1xf32>
      %36 = math.rsqrt %35 : vector<8x1xf32>
      %c0_21 = arith.constant 0 : index
      %c0_22 = arith.constant 0 : index
      %37 = vector.load %arg5[%c0_21, %c0_22] : memref<1x128xf32, #tpu.memory_space<vmem>>, vector<1x128xf32>
      %38 = vector.broadcast %37 : vector<1x128xf32> to vector<8x128xf32>
      %39 = vector.broadcast %36 : vector<8x1xf32> to vector<8x128xf32>
      %40 = arith.mulf %38, %39 : vector<8x128xf32>
      %41 = arith.mulf %22, %40 : vector<8x128xf32>
      %c0_23 = arith.constant 0 : index
      %c0_24 = arith.constant 0 : index
      %42 = vector.load %arg6[%c0_23, %c0_24] : memref<1x128xf32, #tpu.memory_space<vmem>>, vector<1x128xf32>
      %43 = vector.broadcast %42 : vector<1x128xf32> to vector<8x128xf32>
      %44 = arith.addf %41, %43 : vector<8x128xf32>
      %45 = vector.extract_strided_slice %44 {offsets = [0, 0], sizes = [8, 32], strides = [1, 1]} : vector<8x128xf32> to vector<8x32xf32>
      %c0_25 = arith.constant 0 : index
      %c0_26 = arith.constant 0 : index
      %46 = vector.load %arg7[%c0_25, %c0_26] : memref<8x32xf32, #tpu.memory_space<vmem>>, vector<8x32xf32>
      tpu.vector_store %arg7[%c0_25, %c0_26], %45 {strides = array<i32>} : memref<8x32xf32, #tpu.memory_space<vmem>>, vector<8x32xf32>,
    } else {
    }
    return
  }
  func.func @transform_0(%arg0: i32, %arg1: i32) -> (i32, i32) {
    %c0_i32 = arith.constant 0 : i32
    return %arg0, %arg1 : i32, i32
  }
  func.func @transform_1(%arg0: i32, %arg1: i32) -> (i32, i32) {
    %c0_i32 = arith.constant 0 : i32
    %c0_i32_0 = arith.constant 0 : i32
    return %arg1, %c0_i32 : i32, i32
  }
  func.func @transform_2(%arg0: i32, %arg1: i32) -> (i32, i32) {
    %c0_i32 = arith.constant 0 : i32
    %c0_i32_0 = arith.constant 0 : i32
    %c0_i32_1 = arith.constant 0 : i32
    return %c0_i32, %c0_i32_0 : i32, i32
  }
  func.func @transform_3(%arg0: i32, %arg1: i32) -> (i32, i32) {
    %c0_i32 = arith.constant 0 : i32
    %c0_i32_0 = arith.constant 0 : i32
    %c0_i32_1 = arith.constant 0 : i32
    return %c0_i32, %c0_i32_0 : i32, i32
  }
  func.func @transform_4(%arg0: i32, %arg1: i32) -> (i32, i32) {
    %c0_i32 = arith.constant 0 : i32
    %c0_i32_0 = arith.constant 0 : i32
    %c0_i32_1 = arith.constant 0 : i32
    return %c0_i32, %c0_i32_0 : i32, i32
  }
  func.func @transform_5(%arg0: i32, %arg1: i32) -> (i32, i32) {
    %c0_i32 = arith.constant 0 : i32
    %c0_i32_0 = arith.constant 0 : i32
    return %arg0, %c0_i32 : i32, i32
  }
}

</mosaic_0001>

<bundles_post_ra>
// kernel: tpu_custom_call.1
= control target key start
LH: loop header
LB: loop body
LE: loop exit
PB: predicated region body
PF: predicated region fallthrough
CT: control target
= control target key end

     0   :  { %10 = vsyncpa [#allocation4], 0  ;;  %s923_s0 = inlined_call_operand.hbm [shape: f32[16,32], index: 0, kind: input, shape index: {}]   ;;  %s924_s1 = inlined_call_operand.hbm [shape: bf16[32,128], index: 1, kind: input, shape index: {}]   ;;  %s925_s2 = inlined_call_operand.vmem [shape: f32[1,128], index: 2, kind: input, shape index: {}]   ;;  %s926_s3 = inlined_call_operand.vmem [shape: f32[1,128], index: 3, kind: input, shape index: {}]   ;;  %s927_s4 = inlined_call_operand.vmem [shape: f32[1,128], index: 4, kind: input, shape index: {}]   ;;  %s928_s5 = inlined_call_operand.hbm [shape: f32[16,32], index: 5, kind: output, shape index: {}]  }
   0x1   :  { %12 = vsyncpa [#allocation4 + $0x1], 0 }
   0x2   :  { %13 = vsyncpa [#allocation7], 0 }
   0x3   :  { %14 = vsyncpa [#allocation5], 0 }
   0x4   :  { %16 = vsyncpa [#allocation5 + $0x1], 0  ;;  %s765_s18 = smov 0   ;;  %s767_s19 = smov 0  }
   0x5   :  { %s769_s20 = smov 0   ;;  %s771_s21 = smov 0  }
   0x6   :  { %s773_s22 = smov 0   ;;  %s775_s23 = smov 0  }
   0x7 LB: > { %s478_s24 = sadd.s32 4294967295, %s730_s23   ;;  %p480_p0 = scmp.ge.s32.totalorder %s730_s23, 1  ;;  %s730_s23 = sphi %s775_s23, %s22_s23   ;;  %s726_s22 = sphi %s773_s22, %s939_s22   ;;  %s722_s21 = sphi %s771_s21, %s938_s21   ;;  %s718_s20 = sphi %s769_s20, %s937_s20   ;;  %s714_s19 = sphi %s767_s19, %s936_s19   ;;  %s710_s18 = sphi %s765_s18, %s935_s18  }
   0x8   : > { %p797_p1 = scmp.eq.s32.totalorder %s478_s24, 0  ;;  %p182_p2 = scmp.lt.s32.totalorder %s730_s23, 3 }
   0x9   : > { %s196_s28 = sshll.u32 %s924_s1, 4  ;;  %s732_s30 = smov [#allocation6]   ;;  %s197_s28 = int_to_ptr.hbm [resolvable:$true] %s196_s28 }
   0xa   : > { %p805_p3 = pnand %p480_p0, %p182_p2  ;;  %s198_s6 = sshll.u32 %s732_s30, 4  ;;  %s199_s6 = int_to_ptr.vmem [resolvable:$true] %s198_s6 }
   0xb   : > { %p482_p6 = scmp.ge.s32.totalorder %s730_s23, 2  ;;  %s733_s7 = smov 64  }
   0xc   : > { %p512_p4 = pneg %p805_p3  ;;  %s734_s8 = smov 4  }
   0xd   : > { %s479_s9 = sadd.s32 4294967294, %s730_s23   ;;  %s34_s10 = sadd.s32 1, %s726_s22 }
   0xe   : > { %p513_p5 = pnand %p512_p4, %p797_p1  ;;  %s43_s11 = sadd.s32 1, %s718_s20 }
   0xf   : > { %p36_p7 = scmp.ge.s32.totalorder %s34_s10, 2  ;;  %p50_p8 = scmp.ne.s32.totalorder %s718_s20, %s714_s19 }
  0x10   : > { %515 = dma.hbm_to_vmem [thread:$0]  (!%p513_p5), %s197_s28, 256, %s199_s6, [#allocation7], %s733_s7, %s733_s7, %s734_s8  }
  0x11   : > { %p51_p9 = scmp.eq.s32.totalorder %s730_s23, 0  ;;  %p56_p10 = scmp.ne.s32.totalorder %s714_s19, %s710_s18 }
  0x12   : > { %s941_s10 = smov (%p36_p7, %s34_s10), 0  ;;  %p169_p13 = scmp.eq.s32.totalorder %s478_s24, 1 }
  0x13   : > { %p824_p11 = por %p51_p9, %p50_p8  ;;  %p830_p12 = por %p797_p1, %p56_p10 }
  0x14   : > { %s38_s14 = ssub.s32 %s726_s22, %s941_s10  ;;  %p175_p2 = scmp.eq.s32.totalorder %s479_s9, 1 }
  0x15   : > { %p41_p0 = scmp.eq.s32.totalorder %s38_s14, 0  ;;  %p836_p4 = por %p169_p13, %p50_p8 }
  0x16   : > { %p525_p5 = scmp.lt.s32.totalorder %s730_s23, 2  ;;  %p844_p7 = por %p175_p2, %p56_p10 }
  0x17   : > { %s842_s16 = scalar_select %p41_p0, %s718_s20, %s43_s11  }
  0x18   : > { %s221_s26 = sand.u32 1, %s718_s20   ;;  %s484_s28 = sshll.u32 %s726_s22, 3 }
  0x19   : > { %s483_s27 = sshll.u32 %s221_s26, 3  ;;  %s230_s24 = scalar_lea.hbm %s923_s0, %s484_s28 }
  0x1a   : > { %s225_s7 = scalar_lea.vmem [#allocation3], %s483_s27  ;;  %s232_s9 = sshll.u32 %s230_s24, 4  ;;  %s233_s9 = int_to_ptr.hbm [resolvable:$true] %s232_s9 }
  0x1b   : > { %s234_s8 = sshll.u32 %s225_s7, 4  ;;  %p517_p8 = pnand %p525_p5, %p824_p11  ;;  %s235_s8 = int_to_ptr.vmem [resolvable:$true] %s234_s8 }
  0x1c   : > { %s222_s11 = scalar_lea.sflag [#allocation4], %s221_s26  ;;  %243 = sbr.rel (%p805_p3) target bundleno = 445 (0x1bd), region = 40 }
  0x1d   : > { %519 = dma.hbm_to_vmem [thread:$0]  (!%p517_p8), %s233_s9, 128, %s235_s8, %s222_s11  }
  0x1e   : > { %s858_s14 = sand.u32 (!%p805_p3), 1, %s714_s19  }
  0x1f   : > { %s486_s28 = sshll.u32 (!%p805_p3), %s858_s14, 3  ;;  %s246_s27 = scalar_lea.sflag (!%p805_p3), [#allocation4], %s858_s14 }
  0x20   : > { %s249_s30 = scalar_lea.vmem (!%p805_p3), [#allocation3], %s486_s28 }
  0x21   : > { %697 = dma.done.wait (%p830_p12), %s246_s27, 128  }
  0x22   : > { %699 = vsyncadd (%p830_p12), %s246_s27, 4294967168 }
  0x23   : > { %701 = dma.done.wait (%p797_p1), [#allocation7], 256  }
  0x24   : > { %703 = vsyncadd (%p797_p1), [#allocation7], 4294967040  ;;  %v503_v0 = vld [vmem:[#allocation6 + $0x8] sm:$0xff]  ;;  %v502_v1 = vld [vmem:[#allocation6] sm:$0xff]  ;;  %vm308_vm0 = vcmask 261120   ;;  %s499_s25 = sshll.u32 %s722_s21, 3 }
  0x25   : > { %318 = vmatpush.bf16.msra.mxu0 %v503_v0  ;;  %v290_v2 = vld [vmem:[%s249_s30] sm:$0xff]  ;;  %s382_s7 = scalar_lea.hbm %s928_s5, %s499_s25  ;;  %s281_s21 = scalar_lea.vmem [#allocation8], %s486_s28 }
  0x26   : > { %v291_v3 = vpack.c.bf16 %v290_v2, %v290_v2  ;;  %v579_v4 = vld [vmem:[%s925_s2] ss:$0 sm:$0xff]  ;;  %s384_s11 = sshll.u32 %s281_s21, 4  ;;  %s386_s27 = sshll.u32 %s382_s7, 4  ;;  %s385_s11 = int_to_ptr.vmem [resolvable:$true] %s384_s11  ;;  %s387_s27 = int_to_ptr.hbm [resolvable:$true] %s386_s27 }
  0x27   : > { %v580_v24 = vld [vmem:[%s926_s3] ss:$0 sm:$0xff]  ;;  %s372_s30 = scalar_lea.sflag [#allocation5], %s858_s14  ;;  %s658_s29 = sshra.s32 %s387_s27, 4  ;;  %s659_s29 = int_to_ptr.hbm [resolvable:$true] %s658_s29 }
  0x28   : > { %v581_v28 = vld [vmem:[%s927_s4] ss:$0 sm:$0xff]  ;;  %s660_s12 = scalar_lea.hbm %s659_s29, 8  ;;  %s664_s28 = scalar_lea.hbm %s928_s5, 16 }
  0x29   : > { %319 = vmatpush.bf16.msra.mxu0 %v502_v1  ;;  %p661_p1 = scmp.ne.s32.totalorder %s659_s29, %s660_s12  ;;  %p665_p10 = scmp.lt.s32.totalorder %s659_s29, %s928_s5 }
  0x2a   : > { %p666_p11 = scmp.lt.s32.totalorder %s664_s28, %s660_s12 }
  0x2b   : > { %p662_p3 = pnand %p661_p1, %p836_p4 }
  0x2c   : > { %497 = vmatmul.msk.bf16.vlgmr.msra.gmra.mxu0 %vm308_vm0, %v291_v3  ;;  %p667_p12 = por %p666_p11, %p665_p10 }
  0x2d   : > { %p663_p9 = pneg %p662_p3 }
  0x2f   : > { %p668_p13 = pnand %p667_p12, %p663_p9 }
  0xa9   : > { %v321_v5 = vpop.f32.mrf.mxu0 }
  0xaa   : > { %v335_v6 = vadd.f32 %v579_v4, %v321_v5 }
  0xac   : > { %336 = vadd.xlane.f32.xlu0 %v335_v6 }
  0xb1   : > { %v323_v7 = vpop.f32.mrf.mxu0 }
 0x11f   : > { %v337_v8 = vpop.xlane.xlu0 %336 }
 0x120   : > { %v338_v9 = vmul.f32 0.03125, %v337_v8 }
 0x122   : > { %v339_v10 = vsub.f32 %v335_v6, %v338_v9  ;;  %v343_v12 = vmul.f32 %v338_v9, %v338_v9 }
 0x124   : > { %v340_v11 = vmul.f32 %v339_v10, %v339_v10  ;;  %v344_v13 = vmul.f32 96.0, %v343_v12 }
 0x126   : > { %341 = vadd.xlane.f32.xlu0 %v340_v11 }
 0x199   : > { %v342_v14 = vpop.xlane.xlu0 %341 }
 0x19a   : > { %v345_v15 = vsub.f32 %v342_v14, %v344_v13 }
 0x19c   : > { %v346_v16 = vmax.f32 %v345_v15, 0.0 }
 0x19e   : > { %v347_v17 = vmul.f32 0.03125, %v346_v16 }
 0x1a0   : > { %v348_v18 = vadd.f32 1e-05, %v347_v17 }
 0x1a2   : > { %582 = vrsqrt.f32 %v348_v18  ;;  %vm355_vm2 = vweird.f32 %v348_v18 }
 0x1a8   : > { %v583_v19 = vpop.eup %582 }
 0x1a9   : > { %v350_v20 = vmul.f32 %v583_v19, %v348_v18  ;;  %vm356_vm1 = vweird.f32 %v583_v19 }
 0x1aa   : > { %vm357_vm3 = vmor %vm355_vm2, %vm356_vm1 }
 0x1ab   : > { %v351_v21 = vmul.f32 %v583_v19, %v350_v20 }
 0x1ad   : > { %v352_v22 = vmul.f32 0.5, %v351_v21 }
 0x1af   : > { %v353_v23 = vsub.f32 1.5, %v352_v22 }
 0x1b1   : > { %v354_v25 = vmul.f32 %v583_v19, %v353_v23 }
 0x1b3   : > { %v358_v26 = vsel %vm357_vm3, %v583_v19, %v354_v25 }
 0x1b4   : > { %v363_v27 = vmul.f32 %v580_v24, %v358_v26 }
 0x1b6   : > { %v364_v29 = vmul.f32 %v363_v27, %v339_v10 }
 0x1b8   : > { %v369_v30 = vadd.f32 %v581_v28, %v364_v29 }
 0x1ba   : > { %370 = vst.msk [vmem:[%s281_s21] sm:$0xff] %vm308_vm0, %v369_v30 }
 0x1bb   : > { %671 = shalt.err (!%p668_p13)
}
 0x1bc   : > { %510 = dma.vmem_to_hbm [thread:$0]  (%p836_p4), %s385_s11, 128, %s387_s27, %s372_s30  }
 0x1bd PF: > { %s398_s14 = sand.u32 1, %s710_s18   ;;  %p521_p0 = pnand %p482_p6, %p844_p7 }
 0x1be   : > { %s399_s24 = scalar_lea.sflag [#allocation5], %s398_s14 }
 0x1bf   : > { %p522_p2 = pneg %p521_p0 }
 0x1c1   : > { %705 = dma.done.wait (%p522_p2), %s399_s24, 128  }
 0x1c2   : > { %707 = vsyncadd (%p522_p2), %s399_s24, 4294967168  ;;  %s22_s23 = sadd.s32 1, %s730_s23   ;;  %s935_s18 = smov %s714_s19 }
 0x1c3   : > { %p19_p5 = scmp.ge.s32.totalorder %s22_s23, 4   ;;  %s936_s19 = smov %s718_s20 }
 0x1c4   : > { %s937_s20 = smov %s842_s16  ;;  %s938_s21 = smov %s726_s22 }
 0x1c5   : > { %s939_s22 = smov %s941_s10  ;;  %21 = sbr.rel (!%p19_p5) target bundleno = 7 (0x7), region = 98 }
 0x1ca   :  { %405 = vsyncpa [#allocation4], 1 }
 0x1cb   :  { %407 = vsyncpa [#allocation4 + $0x1], 1 }
 0x1cc   :  { %408 = vsyncpa [#allocation7], 1 }
 0x1cd   :  { %409 = vsyncpa [#allocation5], 1 }
 0x1ce   :  { %411 = vsyncpa [#allocation5 + $0x1], 1 }

</bundles_post_ra>
